<compile_context>
chip_gen: v6e
topology: v6e:2x2x1
jax: 0.10.0
libtpu: 0.0.40
codegen_flags: <defaults>
</compile_context>

<pallas_src>
import functools
import math

import jax
import jax.numpy as jnp
from jax.experimental import pallas as pl
from jax.experimental.pallas import tpu as pltpu


# ------------------------------- kernels -------------------------------------


def _fq_sym_kernel(x_ref, s_ref, o_ref, *, qmin, qmax):
    """Symmetric fake quant: x_dq = clip(round(x / s), qmin, qmax) * s."""
    x = x_ref[...].astype(jnp.float32)      # (tm, tc) lane-dense slab
    s = s_ref[...]                          # (tm, 1) or (1, tc); broadcasts
    inv_s = 1.0 / s                         # tiny; hidden under the HBM roofline
    # NOTE: round(x * (1/s)) can differ from round(x / s) by 1 LSB at exact
    # ties; the reference below uses the same formulation.
    x_q = jnp.clip(jnp.round(x * inv_s), qmin, qmax)
    o_ref[...] = (x_q * s).astype(o_ref.dtype)


def _fq_asym_kernel(x_ref, s_ref, zp_ref, o_ref, *, qmin, qmax):
    """Asymmetric fake quant: x_dq = (clip(round(x/s + zp), qmin, qmax) - zp) * s."""
    x = x_ref[...].astype(jnp.float32)
    s = s_ref[...]
    zp = zp_ref[...]
    inv_s = 1.0 / s
    x_q = jnp.clip(jnp.round(x * inv_s + zp), qmin, qmax)
    o_ref[...] = ((x_q - zp) * s).astype(o_ref.dtype)


# ----------------------------- tiling policy ----------------------------------


def _cdiv(a, b):
    return -(-a // b)


def _round_up(v, m):
    return _cdiv(v, m) * m


def _sublane_multiple(dtype):
    """Native sublane tile: 8 for 32-bit, 16 for 16-bit, 32 for 8-bit dtypes."""
    bits = jnp.dtype(dtype).itemsize * 8
    return max(8, 256 // max(bits, 1))


def _pick_tiles(rows, cols, itemsize, target_bytes, sub):
    """Pick (tm, tc) aiming at ~target_bytes blocks.

    No forced minimum block count: on single-TC parts (v5e/v6e) the grid is a
    serial loop and fewer/larger blocks amortize the ~0.35us per-step cost;
    tensors larger than one target block naturally split into >=2 'parallel'
    blocks, which is what v7x megacore needs.
    """
    row_bytes = cols * itemsize
    if rows * row_bytes <= target_bytes:
        return rows, cols                                   # single block
    if sub * row_bytes <= target_bytes:
        tm = max(sub, ((target_bytes // row_bytes) // sub) * sub)
        tm = min(tm, rows)
        # Even out block sizes across the (unchanged) number of row blocks so
        # a 2-TC part sees balanced work on the 'parallel' axis.
        nb = _cdiv(rows, tm)
        tm = min(tm, max(sub, _round_up(_cdiv(rows, nb), sub)))
        return tm, cols
    # Even a single sublane-slab of full cols exceeds the target: tile the
    # lane axis too (large feature maps), keeping chunks 128-aligned.
    if cols % 128 != 0:
        return min(rows, sub), cols        # cannot split lanes cleanly
    tc = max(128, ((target_bytes // (sub * itemsize)) // 128) * 128)
    return min(rows, sub), min(tc, cols)


# -------------------------------- wrapper -------------------------------------


@functools.partial(
    jax.jit,
    static_argnames=("bit", "c_axis", "symmetric", "target_block_bytes"),
)
def quantizer_forward(x, scale, zero_point, *, bit=8, c_axis=1, symmetric=True,
                      target_block_bytes=4 * 1024 * 1024):
    """Replicates Quantizer.forward for an NCHW activation tensor.

    x:          (N, C, H, W)
    scale:      (C,)  per-channel scale   (granularity = 'channelwise')
    zero_point: (C,)  per-channel zero point (ignored when symmetric)
    """
    if bit == 0:
        return x

    if symmetric:
        qmin, qmax = -(2 ** (bit - 1)), 2 ** (bit - 1) - 1
    else:
        qmin, qmax = 0, 2 ** bit - 1

    assert c_axis == 1, "this wrapper assumes NCHW with channel axis 1"
    N, C, H, W = x.shape
    HW = H * W
    itemsize = jnp.dtype(x.dtype).itemsize
    sub = _sublane_multiple(x.dtype)

    scale_f32 = scale.astype(jnp.float32).reshape(C)
    zp_f32 = zero_point.astype(jnp.float32).reshape(C)

    # ---- free lane-dense 2-D view of the contiguous NCHW buffer -------------
    if HW % 128 == 0:
        layout = "row_channel"             # rows carry the channel index
        rows, cols = N * C, HW
    elif (C * HW) % 128 == 0:
        layout = "lane_channel"            # lanes carry the channel index
        rows, cols = N, C * HW
    else:
        layout = "row_channel"             # masked-lane fallback, still correct
        rows, cols = N * C, HW
        # TODO(synk): pad H*W up to a multiple of 128 (and strip it on the way
        # out) if lane-sparse shapes like 7x7 ever dominate a hot path.

    x2 = x.reshape(rows, cols)
    tm, tc = _pick_tiles(rows, cols, itemsize, target_block_bytes, sub)

    # ---- per-channel params: one small stream, no N-times replication -------
    if layout == "lane_channel":
        # (1, C*H*W) row, broadcast along sublanes inside the kernel.
        s_arr = jnp.broadcast_to(scale_f32[:, None], (C, HW)).reshape(1, cols)
        z_arr = jnp.broadcast_to(zp_f32[:, None], (C, HW)).reshape(1, cols)
        p_spec = pl.BlockSpec((1, tc), lambda i, j: (0, j))
        param_pad_bytes = 8 * _round_up(tc, 128) * 4
    else:
        if tm % C != 0:
            # Try to make row blocks channel-aligned so a single block-worth of
            # params (constant index_map => fetched once) suffices.
            lcm = sub * C // math.gcd(sub, C)
            if lcm <= rows and lcm * tc * itemsize <= 2 * target_block_bytes:
                tm = lcm
        if tm % C == 0:
            # Every row block starts at a multiple of C: ship one block-worth
            # of per-row scales with a constant index_map (stays resident).
            s_arr = jnp.tile(scale_f32, tm // C).reshape(tm, 1)
            z_arr = jnp.tile(zp_f32, tm // C).reshape(tm, 1)
            p_spec = pl.BlockSpec((tm, 1), lambda i, j: (0, 0))
        else:
            # Rare fallback: per-row params (still only 4 B per row of HBM).
            s_arr = jnp.tile(scale_f32, N).reshape(rows, 1)
            z_arr = jnp.tile(zp_f32, N).reshape(rows, 1)
            p_spec = pl.BlockSpec((tm, 1), lambda i, j: (i, 0))
        param_pad_bytes = _round_up(tm, 8) * 128 * 4   # (tm,1) lane-pads in VMEM

    grid = (_cdiv(rows, tm), _cdiv(cols, tc))
    slab_spec = pl.BlockSpec((tm, tc), lambda i, j: (i, j))

    if symmetric:
        kernel = functools.partial(_fq_sym_kernel,
                                   qmin=float(qmin), qmax=float(qmax))
        in_specs = [slab_spec, p_spec]
        operands = (x2, s_arr)
        n_params = 1
    else:
        kernel = functools.partial(_fq_asym_kernel,
                                   qmin=float(qmin), qmax=float(qmax))
        in_specs = [slab_spec, p_spec, p_spec]
        operands = (x2, s_arr, z_arr)
        n_params = 2

    # Explicit scoped-VMEM budget: double-buffered (in + out) blocks,
    # double-buffered params, one f32 intermediate block, 2 MiB headroom.
    blk = _round_up(tm, sub) * _round_up(tc, 128) * itemsize
    f32_blk = _round_up(tm, 8) * _round_up(tc, 128) * 4
    footprint = 4 * blk + 2 * n_params * param_pad_bytes + f32_blk + (2 << 20)
    vmem_limit = int(min(64 << 20, max(32 << 20, footprint)))

    # TODO(synk): expose input_output_aliases={0: 0} (plus caller-side buffer
    # donation) for the case where the un-quantized activation is dead after
    # this op (halves the HBM footprint, not the traffic).
    out2 = pl.pallas_call(
        kernel,
        out_shape=jax.ShapeDtypeStruct((rows, cols), x.dtype),
        grid_spec=pltpu.PrefetchScalarGridSpec(
            num_scalar_prefetch=0,
            grid=grid,
            in_specs=in_specs,
            out_specs=slab_spec,
        ),
        compiler_params=pltpu.CompilerParams(
            dimension_semantics=("parallel", "parallel"),
            vmem_limit_bytes=vmem_limit),
    )(*operands)

    return out2.reshape(N, C, H, W)


# ------------------------------- reference ------------------------------------


def _reference_fake_quant(x, scale, zero_point, bit=8, symmetric=True):
    """Pure-JAX reference of the same fake-quant math (NCHW, c_axis=1)."""
    if bit == 0:
        return x
    if symmetric:
        qmin, qmax = -(2 ** (bit - 1)), 2 ** (bit - 1) - 1
    else:
        qmin, qmax = 0, 2 ** bit - 1
    s = scale.reshape(1, -1, 1, 1).astype(jnp.float32)
    inv_s = 1.0 / s
    zp = zero_point.reshape(1, -1, 1, 1).astype(jnp.float32)
    x_q = jnp.clip(jnp.round(x.astype(jnp.float32) * inv_s + zp), qmin, qmax)
    return ((x_q - zp) * s).astype(x.dtype)


# ------------------------------ demo / check ----------------------------------


if __name__ == "__main__":
    bit = 8
    qmax_sym = 2 ** (bit - 1) - 1

    def sym_params(x):
        # Deterministic "observer": per-channel symmetric scale = max|x|/qmax.
        max_abs = jnp.max(jnp.abs(x), axis=(0, 2, 3))
        return jnp.maximum(max_abs / qmax_sym, 1e-8), jnp.zeros_like(max_abs)

    def check(x, scale, zp, symmetric, msg, **kw):
        out = jax.block_until_ready(
            quantizer_forward(x, scale, zp, bit=bit, c_axis=1,
                              symmetric=symmetric, **kw))
        ref = _reference_fake_quant(x, scale, zp, bit=bit, symmetric=symmetric)
        assert out.shape == x.shape and out.dtype == x.dtype, msg
        assert jnp.allclose(out, ref, atol=1e-5, rtol=1e-5), msg
        return out

    # 1) Lane-dense H*W (256), single block, channel-aligned constant params.
    x = jax.random.normal(jax.random.PRNGKey(0), (2, 4, 16, 16), jnp.float32)
    s0, z0 = sym_params(x)
    check(x, s0, z0, True, "sym mismatch")

    # 2) Multi-block row grid with a partial last block + per-row param path.
    x_b = jax.random.normal(jax.random.PRNGKey(1), (2, 6, 16, 16), jnp.float32)
    s_b, z_b = sym_params(x_b)
    check(x_b, s_b, z_b, True, "tiled mismatch", target_block_bytes=8 * 1024)

    # 3) Two-axis grid (rows and 128-aligned cols both tiled).
    x_c = jax.random.normal(jax.random.PRNGKey(2), (2, 4, 16, 32), jnp.float32)
    s_c, z_c = sym_params(x_c)
    check(x_c, s_c, z_c, True, "cols-grid mismatch", target_block_bytes=8 * 1024)

    # 4) Asymmetric (unsigned) quantization with non-zero zero_point.
    qmax_asym = 2 ** bit - 1
    x_min = jnp.min(x, axis=(0, 2, 3))
    x_max = jnp.max(x, axis=(0, 2, 3))
    s_a = jnp.maximum((x_max - x_min) / qmax_asym, 1e-8)
    z_a = jnp.clip(jnp.round(-x_min / s_a), 0, qmax_asym)
    check(x, s_a, z_a, False, "asym mismatch")

    # 5) H*W not a multiple of 128 but C*H*W is -> lane-channel layout.
    x_d = jax.random.normal(jax.random.PRNGKey(3), (4, 32, 4, 4), jnp.float32)
    s_d, z_d = sym_params(x_d)
    check(x_d, s_d, z_d, True, "lane-channel mismatch")

    # 6) Neither H*W nor C*H*W multiple of 128 -> masked-lane fallback.
    x_e = jax.random.normal(jax.random.PRNGKey(4), (2, 4, 7, 7), jnp.float32)
    s_e, z_e = sym_params(x_e)
    check(x_e, s_e, z_e, True, "masked-lane mismatch")

    print("KERNEL_OK")
</pallas_src>

<mosaic_0001>
module attributes {stable_mosaic.version = 11 : i64} {
  func.func @_fq_sym_kernel(%arg0: i32, %arg1: i32, %arg2: memref<8x256xf32, #tpu.memory_space<vmem>>, %arg3: memref<8x1xf32, #tpu.memory_space<vmem>>, %arg4: memref<8x256xf32, #tpu.memory_space<vmem>>) attributes {dimension_semantics = [#tpu.dimension_semantics<parallel>, #tpu.dimension_semantics<parallel>], iteration_bounds = array<i64: 1, 1>, scalar_prefetch = 0 : i64, scratch_operands = 0 : i64, tpu.core_type = #tpu.core_type<tc>, window_params = [{transform_indices = @transform_0, window_bounds = array<i64: 8, 256>}, {pipeline_mode = #tpu.pipeline_mode<synchronous>, transform_indices = @transform_1, window_bounds = array<i64: 8, 1>}, {transform_indices = @transform_2, window_bounds = array<i64: 8, 256>}]} {
    %c0 = arith.constant 0 : index
    %c0_0 = arith.constant 0 : index
    %0 = vector.load %arg2[%c0, %c0_0] : memref<8x256xf32, #tpu.memory_space<vmem>>, vector<8x256xf32>
    %c0_1 = arith.constant 0 : index
    %c0_2 = arith.constant 0 : index
    %1 = vector.load %arg3[%c0_1, %c0_2] : memref<8x1xf32, #tpu.memory_space<vmem>>, vector<8x1xf32>
    %cst = arith.constant 1.000000e+00 : f32
    %2 = vector.broadcast %cst : f32 to vector<8x1xf32>
    %3 = arith.divf %2, %1 : vector<8x1xf32>
    %4 = vector.broadcast %3 : vector<8x1xf32> to vector<8x256xf32>
    %5 = arith.mulf %0, %4 : vector<8x256xf32>
    %6 = math.roundeven %5 : vector<8x256xf32>
    %cst_3 = arith.constant -1.280000e+02 : f32
    %cst_4 = arith.constant 1.270000e+02 : f32
    %7 = vector.broadcast %cst_3 : f32 to vector<8x256xf32>
    %8 = arith.maximumf %7, %6 : vector<8x256xf32>
    %9 = vector.broadcast %cst_4 : f32 to vector<8x256xf32>
    %10 = arith.minimumf %9, %8 : vector<8x256xf32>
    %11 = vector.broadcast %1 : vector<8x1xf32> to vector<8x256xf32>
    %12 = arith.mulf %10, %11 : vector<8x256xf32>
    %c0_5 = arith.constant 0 : index
    %c0_6 = arith.constant 0 : index
    %13 = vector.load %arg4[%c0_5, %c0_6] : memref<8x256xf32, #tpu.memory_space<vmem>>, vector<8x256xf32>
    tpu.vector_store %arg4[%c0_5, %c0_6], %12 {strides = array<i32>} : memref<8x256xf32, #tpu.memory_space<vmem>>, vector<8x256xf32>,
    return
  }
  func.func @transform_0(%arg0: i32, %arg1: i32) -> (i32, i32) {
    %c0_i32 = arith.constant 0 : i32
    return %arg0, %arg1 : i32, i32
  }
  func.func @transform_1(%arg0: i32, %arg1: i32) -> (i32, i32) {
    %c0_i32 = arith.constant 0 : i32
    %c0_i32_0 = arith.constant 0 : i32
    %c0_i32_1 = arith.constant 0 : i32
    return %c0_i32, %c0_i32_0 : i32, i32
  }
  func.func @transform_2(%arg0: i32, %arg1: i32) -> (i32, i32) {
    %c0_i32 = arith.constant 0 : i32
    return %arg0, %arg1 : i32, i32
  }
}

</mosaic_0001>

<bundles_post_ra>
// kernel: tile.0
= control target key start
LH: loop header
LB: loop body
LE: loop exit
PB: predicated region body
PF: predicated region fallthrough
CT: control target
= control target key end

     0   :  { %s35_s8 = smov 125   ;;  %vm8_vm0 = vcmask 7168   ;;  %s36_s11 = smov 126   ;;  %s62_s0 = inlined_call_operand.vmem [shape: f32[2,4], index: 0, kind: input, shape index: {}]   ;;  %s63_s1 = inlined_call_operand.vmem [shape: f32[8,1], index: 1, kind: output, shape index: {}]  }
   0x1   :  { %v5_v0 = vld [vmem:[%s62_s0] sm:$0x3]  ;;  %s34_s0 = smov 127  }
   0x2   :  { %6 = vst [vmem:[#allocation0] sm:$0x3] %v5_v0 }
   0x9   :  { %v10_v1 = vld [vmem:[#allocation0] sm:$0x3]  }
   0xa   :  { %v22_v2 = vld [vmem:[#allocation0] sm:$0x3]   ;;  %11 = vrot.lane.b32.xlu0 %v10_v1, %s34_s0 }
   0xb   :  { %23 = vrot.lane.b32.xlu1 %v22_v2, %s35_s8  ;;  %v7_v3 = vld [vmem:[#allocation0] sm:$0x3]  }
   0xc   :  { %v16_v4 = vld [vmem:[#allocation0] sm:$0x3]   ;;  %9 = vst.msk [vmem:[%s63_s1] ss:$4 sm:$0x3] %vm8_vm0, %v7_v3  }
   0xe   :  { %17 = vrot.lane.b32.xlu0 %v16_v4, %s36_s11 }
  0x7c   :  { %v12_v5 = vpop.permute.xlu0 %11  }
  0x7d   :  { %v24_v6 = vpop.permute.xlu1 %23   ;;  %28 = vst.msk [vmem:[%s63_s1 + $0x1] ss:$4 sm:$0x3] %vm8_vm0, %v12_v5  }
  0x7e   :  { %30 = vst.msk [vmem:[%s63_s1 + $0x3] ss:$4 sm:$0x3] %vm8_vm0, %v24_v6  }
  0x80   :  { %v18_v7 = vpop.permute.xlu0 %17  }
  0x81   :  { %29 = vst.msk [vmem:[%s63_s1 + $0x2] ss:$4 sm:$0x3] %vm8_vm0, %v18_v7  }

// kernel: tile.8
= control target key start
LH: loop header
LB: loop body
LE: loop exit
PB: predicated region body
PF: predicated region fallthrough
CT: control target
= control target key end

     0   :  { %s22_s0 = inlined_call_operand.vmem [shape: f32[4], index: 0, kind: input, shape index: {}]   ;;  %s23_s1 = inlined_call_operand.vmem [shape: f32[2,4], index: 1, kind: output, shape index: {}]  }
   0x1   :  { %v4_v0 = vld [vmem:[%s22_s0] ss:$0 sm:$0xff] }
   0x2   :  { %5 = vst [vmem:[%s23_s1] sm:$0x3] %v4_v0 }

// kernel: quantizer_forward.1
= control target key start
LH: loop header
LB: loop body
LE: loop exit
PB: predicated region body
PF: predicated region fallthrough
CT: control target
= control target key end

     0   :  { %v62_v0 = vmov 0   ;;  %s93_s1 = inlined_call_operand.vmem [shape: f32[8,1], index: 1, kind: input, shape index: {}]   ;;  %s94_s0 = inlined_call_operand.vmem [shape: f32[8,256], index: 0, kind: input, shape index: {}]   ;;  %s95_s2 = inlined_call_operand.vmem [shape: f32[8,256], index: 2, kind: output, shape index: {}]  }
   0x1   :  { %59 = vset.pattern.permute.xlu0 %v62_v0  ;;  %v13_v1 = vld [vmem:[%s93_s1] sm:$0xff]  ;;  %v12_v4 = vld [vmem:[%s94_s0 + $0x8] sm:$0xff] }
   0x2   :  { %60 = vrcp.f32 %v13_v1  ;;  %v11_v3 = vld [vmem:[%s94_s0] sm:$0xff] }
   0xf   :  { %v61_v2 = vpop.eup %60 }
  0x10   :  { %18 = vperm.xlu0 %59, %v61_v2  }
  0x14   :  { %31 = vperm.xlu0 %59, %v13_v1  }
  0x8b   :  { %v19_v5 = vpop.permute.xlu0 %18 }
  0x8c   :  { %v21_v6 = vmul.f32 %v19_v5, %v11_v3  ;;  %v22_v7 = vmul.f32 %v19_v5, %v12_v4 }
  0x8e   :  { %v44_v8 = vcvt.f32.s32 %v21_v6  ;;  %v52_v9 = vcvt.f32.s32 %v22_v7  ;;  %v42_v12 = vand.u32 2147483647, %v21_v6  ;;  %v50_v13 = vand.u32 2147483647, %v22_v7 }
  0x8f   :  { %v47_v15 = vand.u32 2147483648, %v21_v6  ;;  %v55_v17 = vand.u32 2147483648, %v22_v7  ;;  %v32_v26 = vpop.permute.xlu0 %31 }
  0x90   :  { %v45_v10 = vcvt.s32.f32 %v44_v8  ;;  %v53_v11 = vcvt.s32.f32 %v52_v9  ;;  %vm43_vm0 = vcmp.lt.f32.partialorder %v42_v12, 8388608.0  ;;  %vm51_vm1 = vcmp.lt.f32.partialorder %v50_v13, 8388608.0 }
  0x92   :  { %v46_v14 = vand.u32 2147483647, %v45_v10  ;;  %v54_v16 = vand.u32 2147483647, %v53_v11 }
  0x94   :  { %v48_v18 = vor.u32 %v47_v15, %v46_v14  ;;  %v56_v19 = vor.u32 %v55_v17, %v54_v16 }
  0x96   :  { %v49_v20 = vsel %vm43_vm0, %v48_v18, %v21_v6  ;;  %v57_v21 = vsel %vm51_vm1, %v56_v19, %v22_v7 }
  0x97   :  { %v25_v22 = vmax.f32 %v49_v20, -128.0  ;;  %v26_v23 = vmax.f32 %v57_v21, -128.0 }
  0x99   :  { %v27_v24 = vmin.f32 %v25_v22, 127.0  ;;  %v28_v25 = vmin.f32 %v26_v23, 127.0 }
  0x9b   :  { %v34_v27 = vmul.f32 %v32_v26, %v27_v24  ;;  %v35_v28 = vmul.f32 %v32_v26, %v28_v25 }
  0x9d   :  { %36 = vst [vmem:[%s95_s2] sm:$0xff] %v34_v27  ;;  %37 = vst [vmem:[%s95_s2 + $0x8] sm:$0xff] %v35_v28 }

</bundles_post_ra>
